<compile_context>
chip_gen: v7x
topology: tpu7x:2x2x1
jax: 0.10.0
libtpu: 0.0.40
codegen_flags: <defaults>
</compile_context>

<pallas_src>
import jax
import jax.numpy as jnp
from jax.experimental import pallas as pl
from jax.experimental.pallas import tpu as pltpu


def linear1x1_kernel(x_ref, wb_ref, o_ref):
    # y = x * w + b  — one vreg FMA on the VPU. w and b are scalars read from
    # a single packed SMEM operand and broadcast across the vreg. No MXU (a
    # K=1 matmul would waste the systolic array), no transposes.
    w = wb_ref[0]
    b = wb_ref[1]
    o_ref[...] = x_ref[...] * w + b


def simple_net_forward(x, weight, bias):
    """SimpleNet forward: nn.Linear(1, 1).

    x: (N, 1) f32, weight: (1, 1) f32, bias: (1,) f32 -> (N, 1) f32.
    """
    n, in_f = x.shape
    out_f, in_f_w = weight.shape
    assert in_f == 1 and out_f == 1 and in_f_w == 1, "SimpleNet is a 1x1 linear"
    assert n > 0, "empty batch not supported"

    # Pack the two scalar parameters into one SMEM operand (one DMA instead
    # of two at kernel entry).
    wb = jnp.concatenate([weight.reshape(-1), bias.reshape(-1)])  # (2,) f32

    # Single whole-array block, no grid: x goes HBM->VMEM as-is, the kernel
    # does one masked load/FMA/store, the result comes back in torch layout.
    y = pl.pallas_call(
        linear1x1_kernel,
        out_shape=jax.ShapeDtypeStruct((n, out_f), jnp.float32),
        in_specs=[
            pl.BlockSpec(memory_space=pltpu.MemorySpace.VMEM),   # x (full array)
            pl.BlockSpec(memory_space=pltpu.MemorySpace.SMEM),   # packed [w, b]
        ],
        out_specs=pl.BlockSpec(memory_space=pltpu.MemorySpace.VMEM),
    )(x, wb)
    return y


if __name__ == "__main__":
    # Deterministic parameter init (nn.Linear(1, 1): W (1, 1), b (1,))
    key = jax.random.PRNGKey(0)
    k_w, k_b = jax.random.split(key)
    weight = jax.random.uniform(k_w, (1, 1), jnp.float32, -1.0, 1.0)
    bias = jax.random.uniform(k_b, (1,), jnp.float32, -1.0, 1.0)

    # Example input matching the module's usage: x = [[1.],[2.],[3.],[4.],[5.]]
    x = jnp.array([[1.0], [2.0], [3.0], [4.0], [5.0]], dtype=jnp.float32)

    fwd = jax.jit(simple_net_forward)
    y = fwd(x, weight, bias)
    jax.block_until_ready(y)

    # Sanity check against plain-JAX reference
    y_ref = x @ weight.T + bias
    assert y.shape == y_ref.shape, (y.shape, y_ref.shape)
    assert jnp.allclose(y, y_ref, atol=1e-6), (y, y_ref)
    print("KERNEL_OK")
</pallas_src>

<mosaic_0001>
module attributes {stable_mosaic.version = 11 : i64} {
  func.func @linear1x1_kernel(%arg0: memref<5x1xf32, #tpu.memory_space<vmem>>, %arg1: memref<2xf32, #tpu.memory_space<smem>>, %arg2: memref<5x1xf32, #tpu.memory_space<vmem>>) attributes {dimension_semantics = [], scalar_prefetch = 0 : i64, scratch_operands = 0 : i64, tpu.core_type = #tpu.core_type<tc>} {
    %c0 = arith.constant 0 : index
    %0 = memref.load %arg1[%c0] : memref<2xf32, #tpu.memory_space<smem>>
    %c1 = arith.constant 1 : index
    %1 = memref.load %arg1[%c1] : memref<2xf32, #tpu.memory_space<smem>>
    %c0_0 = arith.constant 0 : index
    %c0_1 = arith.constant 0 : index
    %2 = vector.load %arg0[%c0_0, %c0_1] : memref<5x1xf32, #tpu.memory_space<vmem>>, vector<5x1xf32>
    %3 = vector.broadcast %0 : f32 to vector<5x1xf32>
    %4 = arith.mulf %2, %3 : vector<5x1xf32>
    %5 = vector.broadcast %1 : f32 to vector<5x1xf32>
    %6 = arith.addf %4, %5 : vector<5x1xf32>
    %c0_2 = arith.constant 0 : index
    %c0_3 = arith.constant 0 : index
    %7 = vector.load %arg2[%c0_2, %c0_3] : memref<5x1xf32, #tpu.memory_space<vmem>>, vector<5x1xf32>
    tpu.vector_store %arg2[%c0_2, %c0_3], %6 {strides = array<i32>} : memref<5x1xf32, #tpu.memory_space<vmem>>, vector<5x1xf32>,
    return
  }
}

</mosaic_0001>

<bundles_post_ra>
// kernel: simple_net_forward.1
= control target key start
LH: loop header
LB: loop body
LE: loop exit
PB: predicated region body
PF: predicated region fallthrough
CT: control target
= control target key end

     0   :  { %7 = vsyncpa [#allocation3], 0  ;;  %s79_s0 = inlined_call_operand.vmem [shape: f32[5,1], index: 0, kind: input, shape index: {}]   ;;  %s80_s1 = inlined_call_operand.vmem [shape: f32[2], index: 1, kind: input, shape index: {}]   ;;  %s81_s2 = inlined_call_operand.vmem [shape: f32[5,1], index: 2, kind: output, shape index: {}]  }
   0x1   :  { %s16_s11 = sshll.u32 %s80_s1, 4  ;;  %s17_s11 = int_to_ptr.vmem [resolvable:$true] %s16_s11 }
   0x2   :  { %s40_s12 = scalar_lea.vmem %s17_s11, 16  ;;  %p45_p1 = scmp.lt.s32.totalorder %s17_s11, %s17_s11 }
   0x3   :  { %p41_p0 = scmp.ne.s32.totalorder %s17_s11, %s40_s12  ;;  %p46_p2 = scmp.lt.s32.totalorder %s40_s12, %s40_s12 }
   0x5   :  { %p47_p3 = por %p46_p2, %p45_p1 }
   0x7   :  { %p48_p4 = pnand %p47_p3, %p41_p0 }
   0x9   :  { %51 = shalt.err (!%p48_p4)
}
   0xa   :  { %s54_s13 = smov [#allocation2]  }
   0xb   :  { %19 = dma.vmem_to_smem %s17_s11, 16, %s54_s13, [#allocation3]  }
   0xc   :  { %52 = dma.done.wait [#allocation3], 16  }
   0xd   :  { %53 = vsyncadd [#allocation3], 4294967280 }
   0xe   :  { %23 = sfence }
   0xf   :  { %s24_s14 = sld [smem:[#allocation2]]  ;;  %s38_s15 = sld [smem:[#allocation2 + $0x1]]  ;;  %v26_v0 = vld [vmem:[%s79_s0] sm:$0x1f]  ;;  %vm31_vm0 = vcmask 4096  }
  0x15   :  { %v27_v1 = vstv %s24_s14  ;;  %v29_v2 = vstv %s38_s15 }
  0x16   :  { %v28_v3 = vmul.f32 %v27_v1, %v26_v0 }
  0x18   :  { %v30_v4 = vadd.f32 %v29_v2, %v28_v3 }
  0x1a   :  { %32 = vst.msk [vmem:[%s81_s2] sm:$0x1f] %vm31_vm0, %v30_v4 }
  0x1b   :  { %37 = vsyncpa [#allocation3], 1 }

</bundles_post_ra>
